<compile_context>
chip_gen: v6e
topology: v6e:2x2x1
jax: 0.10.0
libtpu: 0.0.40
codegen_flags: <defaults>
</compile_context>

<pallas_src>
import jax
import jax.numpy as jnp
from jax import lax
from jax.experimental import pallas as pl
from jax.experimental.pallas import tpu as pltpu

MAX_REL = 32                        # max_relative_feature
NUM_EMB = 16                        # num_embeddings (ProteinMPNN edge feat default)
NUM_CLASSES = 2 * MAX_REL + 2       # 66 one-hot classes
GROUP = 8                           # elements packed per output row (8*16 = 128 lanes)
CPAD = 128                          # classes padded 66 -> 128 per element (lane tile)
TILE_ELEMS = 4096                   # flat elements per grid step (multiple of 64)


def _pe_kernel(off_ref, msk_ref, wbig_ref, out_ref):
    off = off_ref[...]                            # (g, 8) int32
    msk = msk_ref[...]                            # (g, 8) int32

    # d in [0, 65]
    d = (jnp.clip(off + MAX_REL, 0, 2 * MAX_REL) * msk
         + (1 - msk) * (2 * MAX_REL + 1))         # (g, 8) int32

    # Single-vreg lane id pattern (cheap; NOT a full-tile iota per step).
    lane = lax.broadcasted_iota(jnp.int32, (1, CPAD), 1)          # (1, 128)

    # Lane-dense one-hot via 8 lane-broadcast compares, built directly in bf16
    # (values are exactly 0/1, so bf16 is bit-exact).  No selector matmul.
    blocks = [(d[:, j:j + 1] == lane).astype(jnp.bfloat16)        # (g, 128) each
              for j in range(GROUP)]
    onehot = jnp.concatenate(blocks, axis=-1)                     # (g, 1024) bf16

    # Block-diagonal, bias-folded table -> natively lane-dense (g, 128) output.
    # bf16 x bf16, single MXU pass, f32 accumulate.
    out_ref[...] = jnp.dot(onehot, wbig_ref[...],
                           preferred_element_type=jnp.float32,
                           precision=lax.Precision.DEFAULT)


def init_positional_encodings(weight, bias):
    """Precompute the block-diagonal, bias-folded table once (cache at init).

    weight: [num_emb, 66], bias: [num_emb]  ->  W_big [GROUP*CPAD, GROUP*num_emb] bf16.
    Bias folding is exact because every one-hot row sums to exactly 1.
    """
    table = weight.astype(jnp.float32).T + bias.astype(jnp.float32)[None, :]   # (66, 16)
    table_pad = jnp.zeros((CPAD, NUM_EMB), jnp.float32).at[:NUM_CLASSES, :].set(table)
    # wbig[128*j + c, 16*j + e] = table_pad[c, e]
    wbig = jnp.kron(jnp.eye(GROUP, dtype=jnp.float32), table_pad)               # (1024, 128)
    return wbig.astype(jnp.bfloat16)


def positional_encodings(offset, mask, wbig, *, tile_elems=TILE_ELEMS):
    """offset, mask: int [B, L, K]; wbig: output of init_positional_encodings."""
    orig_shape = offset.shape
    n = 1
    for s in orig_shape:
        n *= s

    off_flat = offset.reshape(-1).astype(jnp.int32)
    msk_flat = mask.reshape(-1).astype(jnp.int32)

    # Shrink the tile for small inputs so tiny problems aren't padded up to
    # TILE_ELEMS, and so the grid gets >= 2 steps (v7x has 2 TensorCores).
    half = -(-n // 2)                                      # ceil(n / 2)
    tile_elems = max(64, min(int(tile_elems), ((half + 63) // 64) * 64))

    n_pad = ((n + tile_elems - 1) // tile_elems) * tile_elems
    if n_pad != n:
        pad = n_pad - n
        off_flat = jnp.pad(off_flat, (0, pad))
        msk_flat = jnp.pad(msk_flat, (0, pad))             # padded rows sliced off below

    off2 = off_flat.reshape(n_pad // GROUP, GROUP)
    msk2 = msk_flat.reshape(n_pad // GROUP, GROUP)

    g_tile = tile_elems // GROUP
    grid = (n_pad // tile_elems,)

    out = pl.pallas_call(
        _pe_kernel,
        out_shape=jax.ShapeDtypeStruct((n_pad // GROUP, GROUP * NUM_EMB), jnp.float32),
        grid_spec=pltpu.PrefetchScalarGridSpec(
            num_scalar_prefetch=0,
            grid=grid,
            in_specs=[
                pl.BlockSpec((g_tile, GROUP), lambda i: (i, 0)),                 # offset
                pl.BlockSpec((g_tile, GROUP), lambda i: (i, 0)),                 # mask
                pl.BlockSpec((GROUP * CPAD, GROUP * NUM_EMB), lambda i: (0, 0)), # W_big (const)
            ],
            out_specs=pl.BlockSpec((g_tile, GROUP * NUM_EMB), lambda i: (i, 0)),
        ),
        compiler_params=pltpu.CompilerParams(
            dimension_semantics=("parallel",)),
    )(off2, msk2, wbig)

    # (n_pad//8, 128) -> (n_pad, 16) is a free row-major reshape; slice only if padded.
    out = out.reshape(n_pad, NUM_EMB)
    if n_pad != n:
        out = out[:n]
    return out.reshape(*orig_shape, NUM_EMB)


def _reference(offset, mask, weight, bias):
    # Exact f32 reference via table lookup (mirrors Linear(one_hot(d).float())).
    d = (jnp.clip(offset + MAX_REL, 0, 2 * MAX_REL) * mask
         + (1 - mask) * (2 * MAX_REL + 1))
    table = weight.astype(jnp.float32).T                     # (66, 16)
    return jnp.take(table, d, axis=0) + bias.astype(jnp.float32)


if __name__ == "__main__":
    key = jax.random.PRNGKey(0)
    k_off, k_msk, k_w, k_b = jax.random.split(key, 4)

    # small shapes: batch=2, residues=16, neighbors=8  -> N = 256
    B, L, K = 2, 16, 8
    offset = jax.random.randint(k_off, (B, L, K), -48, 48, dtype=jnp.int32)
    mask = jax.random.randint(k_msk, (B, L, K), 0, 2, dtype=jnp.int32)

    # deterministic synthetic Linear params: weight [num_emb, 66], bias [num_emb]
    weight = 0.02 * jax.random.normal(k_w, (NUM_EMB, NUM_CLASSES), jnp.float32)
    bias = 0.01 * jax.random.normal(k_b, (NUM_EMB,), jnp.float32)

    wbig = init_positional_encodings(weight, bias)          # precomputed once
    E = positional_encodings(offset, mask, wbig)
    E = jax.block_until_ready(E)

    E_ref = _reference(offset, mask, weight, bias)
    assert E.shape == (B, L, K, NUM_EMB), E.shape
    # bf16 rounding of the 0.02-scale table inside the single-pass MXU matmul
    # gives <= ~2e-4 absolute error; real selection/bias bugs are O(2e-2).
    assert jnp.allclose(E, E_ref, atol=2e-3, rtol=0), "mismatch vs reference"

    print("KERNEL_OK")
</pallas_src>

<mosaic_0001>
module attributes {stable_mosaic.version = 11 : i64} {
  func.func @_pe_kernel(%arg0: i32, %arg1: memref<16x8xi32, #tpu.memory_space<vmem>>, %arg2: memref<16x8xi32, #tpu.memory_space<vmem>>, %arg3: memref<1024x128xbf16, #tpu.memory_space<vmem>>, %arg4: memref<16x128xf32, #tpu.memory_space<vmem>>) attributes {dimension_semantics = [#tpu.dimension_semantics<parallel>], iteration_bounds = array<i64: 2>, scalar_prefetch = 0 : i64, scratch_operands = 0 : i64, tpu.core_type = #tpu.core_type<tc>, window_params = [{transform_indices = @transform_0, window_bounds = array<i64: 16, 8>}, {transform_indices = @transform_1, window_bounds = array<i64: 16, 8>}, {pipeline_mode = #tpu.pipeline_mode<synchronous>, transform_indices = @transform_2, window_bounds = array<i64: 1024, 128>}, {transform_indices = @transform_3, window_bounds = array<i64: 16, 128>}]} {
    %c0 = arith.constant 0 : index
    %c0_0 = arith.constant 0 : index
    %0 = vector.load %arg1[%c0, %c0_0] : memref<16x8xi32, #tpu.memory_space<vmem>>, vector<16x8xi32>
    %c0_1 = arith.constant 0 : index
    %c0_2 = arith.constant 0 : index
    %1 = vector.load %arg2[%c0_1, %c0_2] : memref<16x8xi32, #tpu.memory_space<vmem>>, vector<16x8xi32>
    %c32_i32 = arith.constant 32 : i32
    %2 = vector.broadcast %c32_i32 : i32 to vector<16x8xi32>
    %3 = arith.addi %0, %2 : vector<16x8xi32>
    %c0_i32 = arith.constant 0 : i32
    %c64_i32 = arith.constant 64 : i32
    %4 = vector.broadcast %c0_i32 : i32 to vector<16x8xi32>
    %5 = arith.maxsi %4, %3 : vector<16x8xi32>
    %6 = vector.broadcast %c64_i32 : i32 to vector<16x8xi32>
    %7 = arith.minsi %6, %5 : vector<16x8xi32>
    %8 = arith.muli %7, %1 : vector<16x8xi32>
    %c1_i32 = arith.constant 1 : i32
    %9 = vector.broadcast %c1_i32 : i32 to vector<16x8xi32>
    %10 = arith.subi %9, %1 : vector<16x8xi32>
    %c65_i32 = arith.constant 65 : i32
    %11 = vector.broadcast %c65_i32 : i32 to vector<16x8xi32>
    %12 = arith.muli %10, %11 : vector<16x8xi32>
    %13 = arith.addi %8, %12 : vector<16x8xi32>
    %14 = tpu.iota {dimensions = array<i32: 1>} : vector<1x128xi32>
    %15 = vector.extract_strided_slice %13 {offsets = [0, 0], sizes = [16, 1], strides = [1, 1]} : vector<16x8xi32> to vector<16x1xi32>
    %16 = vector.broadcast %15 : vector<16x1xi32> to vector<16x128xi32>
    %17 = vector.broadcast %14 : vector<1x128xi32> to vector<16x128xi32>
    %18 = arith.cmpi eq, %16, %17 : vector<16x128xi32>
    %19 = arith.extui %18 : vector<16x128xi1> to vector<16x128xi32>
    %20 = arith.sitofp %19 : vector<16x128xi32> to vector<16x128xf32>
    %21 = arith.truncf %20 : vector<16x128xf32> to vector<16x128xbf16>
    %22 = vector.extract_strided_slice %13 {offsets = [0, 1], sizes = [16, 1], strides = [1, 1]} : vector<16x8xi32> to vector<16x1xi32>
    %23 = vector.broadcast %22 : vector<16x1xi32> to vector<16x128xi32>
    %24 = vector.broadcast %14 : vector<1x128xi32> to vector<16x128xi32>
    %25 = arith.cmpi eq, %23, %24 : vector<16x128xi32>
    %26 = arith.extui %25 : vector<16x128xi1> to vector<16x128xi32>
    %27 = arith.sitofp %26 : vector<16x128xi32> to vector<16x128xf32>
    %28 = arith.truncf %27 : vector<16x128xf32> to vector<16x128xbf16>
    %29 = vector.extract_strided_slice %13 {offsets = [0, 2], sizes = [16, 1], strides = [1, 1]} : vector<16x8xi32> to vector<16x1xi32>
    %30 = vector.broadcast %29 : vector<16x1xi32> to vector<16x128xi32>
    %31 = vector.broadcast %14 : vector<1x128xi32> to vector<16x128xi32>
    %32 = arith.cmpi eq, %30, %31 : vector<16x128xi32>
    %33 = arith.extui %32 : vector<16x128xi1> to vector<16x128xi32>
    %34 = arith.sitofp %33 : vector<16x128xi32> to vector<16x128xf32>
    %35 = arith.truncf %34 : vector<16x128xf32> to vector<16x128xbf16>
    %36 = vector.extract_strided_slice %13 {offsets = [0, 3], sizes = [16, 1], strides = [1, 1]} : vector<16x8xi32> to vector<16x1xi32>
    %37 = vector.broadcast %36 : vector<16x1xi32> to vector<16x128xi32>
    %38 = vector.broadcast %14 : vector<1x128xi32> to vector<16x128xi32>
    %39 = arith.cmpi eq, %37, %38 : vector<16x128xi32>
    %40 = arith.extui %39 : vector<16x128xi1> to vector<16x128xi32>
    %41 = arith.sitofp %40 : vector<16x128xi32> to vector<16x128xf32>
    %42 = arith.truncf %41 : vector<16x128xf32> to vector<16x128xbf16>
    %43 = vector.extract_strided_slice %13 {offsets = [0, 4], sizes = [16, 1], strides = [1, 1]} : vector<16x8xi32> to vector<16x1xi32>
    %44 = vector.broadcast %43 : vector<16x1xi32> to vector<16x128xi32>
    %45 = vector.broadcast %14 : vector<1x128xi32> to vector<16x128xi32>
    %46 = arith.cmpi eq, %44, %45 : vector<16x128xi32>
    %47 = arith.extui %46 : vector<16x128xi1> to vector<16x128xi32>
    %48 = arith.sitofp %47 : vector<16x128xi32> to vector<16x128xf32>
    %49 = arith.truncf %48 : vector<16x128xf32> to vector<16x128xbf16>
    %50 = vector.extract_strided_slice %13 {offsets = [0, 5], sizes = [16, 1], strides = [1, 1]} : vector<16x8xi32> to vector<16x1xi32>
    %51 = vector.broadcast %50 : vector<16x1xi32> to vector<16x128xi32>
    %52 = vector.broadcast %14 : vector<1x128xi32> to vector<16x128xi32>
    %53 = arith.cmpi eq, %51, %52 : vector<16x128xi32>
    %54 = arith.extui %53 : vector<16x128xi1> to vector<16x128xi32>
    %55 = arith.sitofp %54 : vector<16x128xi32> to vector<16x128xf32>
    %56 = arith.truncf %55 : vector<16x128xf32> to vector<16x128xbf16>
    %57 = vector.extract_strided_slice %13 {offsets = [0, 6], sizes = [16, 1], strides = [1, 1]} : vector<16x8xi32> to vector<16x1xi32>
    %58 = vector.broadcast %57 : vector<16x1xi32> to vector<16x128xi32>
    %59 = vector.broadcast %14 : vector<1x128xi32> to vector<16x128xi32>
    %60 = arith.cmpi eq, %58, %59 : vector<16x128xi32>
    %61 = arith.extui %60 : vector<16x128xi1> to vector<16x128xi32>
    %62 = arith.sitofp %61 : vector<16x128xi32> to vector<16x128xf32>
    %63 = arith.truncf %62 : vector<16x128xf32> to vector<16x128xbf16>
    %64 = vector.extract_strided_slice %13 {offsets = [0, 7], sizes = [16, 1], strides = [1, 1]} : vector<16x8xi32> to vector<16x1xi32>
    %65 = vector.broadcast %64 : vector<16x1xi32> to vector<16x128xi32>
    %66 = vector.broadcast %14 : vector<1x128xi32> to vector<16x128xi32>
    %67 = arith.cmpi eq, %65, %66 : vector<16x128xi32>
    %68 = arith.extui %67 : vector<16x128xi1> to vector<16x128xi32>
    %69 = arith.sitofp %68 : vector<16x128xi32> to vector<16x128xf32>
    %70 = arith.truncf %69 : vector<16x128xf32> to vector<16x128xbf16>
    %71 = tpu.concatenate %21, %28, %35, %42, %49, %56, %63, %70 in 1 : vector<16x128xbf16>, vector<16x128xbf16>, vector<16x128xbf16>, vector<16x128xbf16>, vector<16x128xbf16>, vector<16x128xbf16>, vector<16x128xbf16>, vector<16x128xbf16> -> vector<16x1024xbf16>
    %c0_3 = arith.constant 0 : index
    %c0_4 = arith.constant 0 : index
    %72 = vector.load %arg3[%c0_3, %c0_4] : memref<1024x128xbf16, #tpu.memory_space<vmem>>, vector<1024x128xbf16>
    %cst = arith.constant dense<0.000000e+00> : vector<16x128xf32>
    %73 = tpu.matmul %71, %72, %cst {dimension_numbers = #tpu.dot_dimension_numbers<[1], [0], [0], [1], [0, 0, 1, 1], [], []>} : vector<16x1024xbf16>, vector<1024x128xbf16>, vector<16x128xf32> -> vector<16x128xf32>
    %c0_5 = arith.constant 0 : index
    %c0_6 = arith.constant 0 : index
    %74 = vector.load %arg4[%c0_5, %c0_6] : memref<16x128xf32, #tpu.memory_space<vmem>>, vector<16x128xf32>
    tpu.vector_store %arg4[%c0_5, %c0_6], %73 {strides = array<i32>} : memref<16x128xf32, #tpu.memory_space<vmem>>, vector<16x128xf32>,
    return
  }
  func.func @transform_0(%arg0: i32) -> (i32, i32) {
    %c0_i32 = arith.constant 0 : i32
    %c0_i32_0 = arith.constant 0 : i32
    return %arg0, %c0_i32 : i32, i32
  }
  func.func @transform_1(%arg0: i32) -> (i32, i32) {
    %c0_i32 = arith.constant 0 : i32
    %c0_i32_0 = arith.constant 0 : i32
    return %arg0, %c0_i32 : i32, i32
  }
  func.func @transform_2(%arg0: i32) -> (i32, i32) {
    %c0_i32 = arith.constant 0 : i32
    %c0_i32_0 = arith.constant 0 : i32
    %c0_i32_1 = arith.constant 0 : i32
    return %c0_i32, %c0_i32_0 : i32, i32
  }
  func.func @transform_3(%arg0: i32) -> (i32, i32) {
    %c0_i32 = arith.constant 0 : i32
    %c0_i32_0 = arith.constant 0 : i32
    return %arg0, %c0_i32 : i32, i32
  }
}

</mosaic_0001>

<bundles_post_ra>
// kernel: tpu_custom_call.1
= control target key start
LH: loop header
LB: loop body
LE: loop exit
PB: predicated region body
PF: predicated region fallthrough
CT: control target
= control target key end

     0   :  { %8 = vsyncpa [#allocation3], 0  ;;  %s1751_s0 = inlined_call_operand.vmem [shape: s32[32,8], index: 0, kind: input, shape index: {}]   ;;  %s1752_s1 = inlined_call_operand.vmem [shape: s32[32,8], index: 1, kind: input, shape index: {}]   ;;  %s1753_s2 = inlined_call_operand.hbm [shape: bf16[1024,128], index: 2, kind: input, shape index: {}]   ;;  %s1754_s3 = inlined_call_operand.hbm [shape: f32[32,128], index: 3, kind: output, shape index: {}]  }
   0x1   :  { %9 = vsyncpa [#allocation4], 0 }
   0x2   :  { %11 = vsyncpa [#allocation4 + $0x1], 0  ;;  %s1583_s12 = smov 0   ;;  %s1585_s13 = smov 0  }
   0x3   :  { %s1587_s14 = smov 0   ;;  %s1589_s15 = smov 0  }
   0x4 LB: > { %s1604_s16 = sadd.s32 4294967295, %s1546_s15   ;;  %s1116_s17 = sadd.s32 4294967294, %s1546_s15   ;;  %s1546_s15 = sphi %s1589_s15, %s1762_s15   ;;  %s1542_s14 = sphi %s1587_s14, %s1761_s14   ;;  %s1538_s13 = sphi %s1585_s13, %s1760_s13   ;;  %s1534_s12 = sphi %s1583_s12, %s1759_s12  }
   0x5   : > { %s1608_s18 = sadd.s32 1, %s1546_s15   ;;  %s97_s19 = sadd.s32 1, %s1542_s14 }
   0x6   : > { %s94_s20 = ssub.s32 %s1546_s15, %s1608_s18  ;;  %p107_p0 = scmp.ne.s32.totalorder %s1542_s14, %s1538_s13 }
   0x7   : > { %p95_p1 = scmp.eq.s32.totalorder %s94_s20, 0  ;;  %p108_p2 = scmp.eq.s32.totalorder %s1604_s16, 1 }
   0x8   : > { %p113_p3 = scmp.ne.s32.totalorder %s1538_s13, %s1534_s12  ;;  %p114_p4 = scmp.eq.s32.totalorder %s1116_s17, 1 }
   0x9   : > { %s1619_s21 = scalar_select %p95_p1, %s1542_s14, %s97_s19  }
   0xa   : > { %p1621_p5 = por %p108_p2, %p107_p0  ;;  %p1625_p6 = por %p114_p4, %p113_p3 }
   0xb   : > { %p1117_p7 = scmp.ge.s32.totalorder %s1546_s15, 1  ;;  %p121_p8 = scmp.lt.s32.totalorder %s1546_s15, 3 }
   0xc   : > { %s1756_s23 = scalar_select %p1625_p6, 1, 0 }
   0xd   : > { %p1331_p9 = scmp.eq.s32.totalorder %s1604_s16, 0  ;;  %p1632_p10 = pnand %p1117_p7, %p121_p8 }
   0xe   : > { %s1548_s25 = smov [#allocation2]  }
   0xf   : > { %s133_s26 = sshll.u32 %s1548_s25, 4  ;;  %p1323_p11 = pneg %p1632_p10  ;;  %s134_s26 = int_to_ptr.vmem [resolvable:$true] %s133_s26 }
  0x10   : > { %s1467_s27 = scalar_lea.vmem %s134_s26, 8192  ;;  %p1475_p3 = scmp.lt.s32.totalorder %s134_s26, %s134_s26 }
  0x11   : > { %p1324_p12 = pnand %p1331_p9, %p1323_p11  ;;  %p1468_p0 = scmp.ne.s32.totalorder %s134_s26, %s1467_s27 }
  0x12   : > { %p1476_p4 = scmp.lt.s32.totalorder %s1467_s27, %s1467_s27 }
  0x13   : > { %p1458_p13 = pneg %p1324_p12 }
  0x14   : > { %p1477_p6 = por %p1476_p4, %p1475_p3 }
  0x15   : > { %p1470_p1 = pnand %p1468_p0, %p1458_p13 }
  0x17   : > { %p1471_p2 = pneg %p1470_p1 }
  0x19   : > { %p1478_p7 = pnand %p1477_p6, %p1471_p2 }
  0x1b   : > { %1481 = shalt.err (!%p1478_p7)
}
  0x1c   : > { %s1549_s28 = smov 64   ;;  %s1550_s29 = smov 4  }
  0x1d   : > { %1326 = dma.hbm_to_vmem [thread:$0]  (!%p1324_p12), %s1753_s2, 8192, %s134_s26, [#allocation3], %s1549_s28, %s1549_s28, %s1550_s29  }
  0x1e   : > { %167 = sbr.rel (%p1632_p10) target bundleno = 442 (0x1ba), region = 32 }
  0x23   : > { %1525 = dma.done.wait (%p1331_p9), [#allocation3], 8192  }
  0x24   : > { %1527 = vsyncadd (%p1331_p9), [#allocation3], 4294959104  ;;  %s1123_s5 = sshll.u32 %s1604_s16, 1  ;;  %v1551_v0 = vmov 1   ;;  %v1552_v1 = vmov 0   ;;  %v1392_v10 = vld [vmem:[#allocation2 + $0x78] sm:$0xff]   ;;  %v232_v60 = vlaneseq }
  0x25   : > { %1380 = vset.pattern.permute.xlu0 %v1551_v0  ;;  %1381 = vset.pattern.permute.xlu1 %v1552_v1  ;;  %p197_p6 = scmp.lt.s32.totalorder %s1123_s5, 3  ;;  %v1393_v12 = vld [vmem:[#allocation2 + $0x38] sm:$0xff]   ;;  %v1394_v16 = vld [vmem:[#allocation2 + $0x70] sm:$0xff]   ;;  %v1396_v20 = vld [vmem:[#allocation2 + $0x68] sm:$0xff]   ;;  %v1553_v36 = vmov 3   ;;  %v1554_v42 = vmov 2  }
  0x26   : > { %1229 = vmatprep.subr.bf16.mxu0 %v1392_v10  ;;  %v1395_v19 = vld [vmem:[#allocation2 + $0x30] sm:$0xff]   ;;  %v1397_v23 = vld [vmem:[#allocation2 + $0x28] sm:$0xff]   ;;  %v1398_v25 = vld [vmem:[#allocation2 + $0xf8] sm:$0xff]   ;;  %v1555_v47 = vmov 5   ;;  %v1556_v48 = vmov 4   ;;  %v1557_v54 = vmov 7  }
  0x27   : > { %s1764_s5 = smov (!%p197_p6, %s1123_s5), 3  ;;  %1230 = vmatpush3.bf16.msra.mxu0 %v1393_v12  ;;  %v1399_v26 = vld [vmem:[#allocation2 + $0xb8] sm:$0xff]   ;;  %v1400_v28 = vld [vmem:[#allocation2 + $0x60] sm:$0xff]   ;;  %1251 = vmatprep.subr.bf16.mxu1 %v1398_v25  ;;  %v1402_v30 = vld [vmem:[#allocation2 + $0xf0] sm:$0xff]   ;;  %v1558_v59 = vmov 6   ;;  %v1676_v63 = vand.u32 127, %v232_v60 }
  0x28   : > { %s1124_s6 = sshll.u32 %s1764_s5, 3  ;;  %1231 = vmatprep.subr.bf16.mxu0 %v1394_v16  ;;  %v1401_v29 = vld [vmem:[#allocation2 + $0x20] sm:$0xff]   ;;  %1252 = vmatpush3.bf16.msra.mxu1 %v1399_v26  ;;  %v1403_v31 = vld [vmem:[#allocation2 + $0xb0] sm:$0xff]   ;;  %v1404_v32 = vld [vmem:[#allocation2 + $0x58] sm:$0xff]   ;;  %s193_s19 = sand.u32 1, %s1538_s13  }
  0x29   : > { %s200_s9 = scalar_lea.vmem %s1751_s0, %s1124_s6  ;;  %s206_s17 = scalar_lea.vmem %s1752_s1, %s1124_s6  ;;  %1253 = vmatprep.subr.bf16.mxu1 %v1402_v30  ;;  %v1405_v33 = vld [vmem:[#allocation2 + $0x18] sm:$0xff]   ;;  %v1406_v34 = vld [vmem:[#allocation2 + $0xe8] sm:$0xff]   ;;  %v1408_v37 = vld [vmem:[#allocation2 + $0x50] sm:$0xff]  }
  0x2a   : > { %v210_v2 = vld [vmem:[%s200_s9] sm:$0xff]  ;;  %v211_v4 = vld [vmem:[%s200_s9 + $0x8] sm:$0xff]  ;;  %v1409_v38 = vld [vmem:[#allocation2 + $0x10] sm:$0xff]   ;;  %s1122_s20 = sshll.u32 %s193_s19, 4  ;;  %s1228_s26 = sshll.u32 %s1604_s16, 8 }
  0x2b   : > { %v212_v3 = vld [vmem:[%s206_s17] sm:$0xff]  ;;  %v214_v5 = vadd.s32 32, %v210_v2  ;;  %v213_v7 = vld [vmem:[%s206_s17 + $0x8] sm:$0xff]  ;;  %v215_v8 = vadd.s32 32, %v211_v4  ;;  %1232 = vmatpush3.bf16.msra.mxu0 %v1395_v19  ;;  %v1414_v43 = vld [vmem:[#allocation2 + $0xd8] sm:$0xff]   ;;  %s195_s24 = scalar_lea.vmem [#allocation5], %s1122_s20  ;;  %s1709_s29 = scalar_lea.hbm %s1754_s3, %s1228_s26 }
  0x2c   : > { %v226_v6 = vsub.s32 1, %v212_v3  ;;  %v227_v9 = vsub.s32 1, %v213_v7  ;;  %1233 = vmatprep.subr.bf16.mxu0 %v1396_v20  ;;  %1254 = vmatpush3.bf16.msra.mxu1 %v1403_v31  ;;  %v1407_v35 = vld [vmem:[#allocation2 + $0xa8] sm:$0xff]   ;;  %v1410_v39 = vld [vmem:[#allocation2 + $0xe0] sm:$0xff]   ;;  %v1415_v45 = vld [vmem:[#allocation2 + $0x98] sm:$0xff]   ;;  %s1030_s25 = sshll.u32 %s195_s24, 4  ;;  %s1704_s25 = int_to_ptr.vmem [resolvable:$true] %s1030_s25 }
  0x2d   : > { %vm216_vm0 = vcmp.gt.s32.totalorder %v214_v5, 0  ;;  %vm218_vm1 = vcmp.gt.s32.totalorder %v215_v8, 0  ;;  %1255 = vmatprep.subr.bf16.mxu1 %v1406_v34  ;;  %v1411_v40 = vld [vmem:[#allocation2 + $0xa0] sm:$0xff]   ;;  %v1412_v41 = vld [vmem:[#allocation2 + $0x48] sm:$0xff]   ;;  %v1418_v49 = vld [vmem:[#allocation2 + $0xd0] sm:$0xff]   ;;  %s1711_s30 = scalar_lea.sflag [#allocation4], %s193_s19 }
  0x2e   : > { %v228_v11 = vmul.u32 65, %v226_v6  ;;  %v217_v13 = vsel %vm216_vm0, %v214_v5, 0  ;;  %v219_v14 = vsel %vm218_vm1, %v215_v8, 0  ;;  %v229_v15 = vmul.u32 65, %v227_v9  ;;  %v1413_v44 = vld [vmem:[#allocation2 + $0x8] sm:$0xff]   ;;  %v1416_v46 = vld [vmem:[#allocation2 + $0x40] sm:$0xff]  }
  0x2f   : > { %vm220_vm2 = vcmp.lt.s32.totalorder %v217_v13, 64  ;;  %vm222_vm3 = vcmp.lt.s32.totalorder %v219_v14, 64  ;;  %1234 = vmatpush3.bf16.msra.mxu0 %v1397_v23  ;;  %v1417_v50 = vld [vmem:[#allocation2] sm:$0xff]   ;;  %v1419_v51 = vld [vmem:[#allocation2 + $0x90] sm:$0xff]   ;;  %v1420_v52 = vld [vmem:[#allocation2 + $0x178] sm:$0xff]   ;;  %s1482_s4 = scalar_lea.vmem %s1704_s25, 256 }
  0x30   : > { %v221_v17 = vsel %vm220_vm2, %v217_v13, 64  ;;  %v223_v18 = vsel %vm222_vm3, %v219_v14, 64  ;;  %1235 = vmatprep.subr.bf16.mxu0 %v1400_v28  ;;  %1256 = vmatpush3.bf16.msra.mxu1 %v1407_v35  ;;  %v1421_v53 = vld [vmem:[#allocation2 + $0xc8] sm:$0xff]   ;;  %v1425_v56 = vld [vmem:[#allocation2 + $0xc0] sm:$0xff]   ;;  %v1430_v58 = vld [vmem:[#allocation2 + $0x1f8] sm:$0xff]   ;;  %p1483_p8 = scmp.ne.s32.totalorder %s1704_s25, %s1482_s4  ;;  %s1560_s16 = smov [#allocation5]  }
  0x31   : > { %v224_v21 = vmul.u32 %v221_v17, %v212_v3  ;;  %v225_v22 = vmul.u32 %v223_v18, %v213_v7  ;;  %1257 = vmatprep.subr.bf16.mxu1 %v1410_v39  ;;  %v1423_v55 = vld [vmem:[#allocation2 + $0x88] sm:$0xff]   ;;  %v1427_v57 = vld [vmem:[#allocation2 + $0x80] sm:$0xff]   ;;  %v1422_v2 = vld [vmem:[#allocation2 + $0x138] sm:$0xff]   ;;  %v1559_v4 = vmov 1.0|1.0   ;;  %s1486_s5 = sshll.u32 %s1560_s16, 4  ;;  %s1487_s5 = int_to_ptr.vmem [resolvable:$false] %s1486_s5 }
  0x32   : > { %v1424_v3 = vld [vmem:[#allocation2 + $0x170] sm:$0xff]   ;;  %v1428_v8 = vld [vmem:[#allocation2 + $0x168] sm:$0xff]   ;;  %v1431_v12 = vld [vmem:[#allocation2 + $0x1b8] sm:$0xff]   ;;  %p1484_p9 = pnand %p1483_p8, %p1621_p5  ;;  %s1488_s6 = scalar_lea.vmem %s1487_s5, 512 }
  0x33   : > { %v1656_v24 = vadd.s32 %v228_v11, %v224_v21  ;;  %v1660_v27 = vadd.s32 %v229_v15, %v225_v22  ;;  %1236 = vmatpush3.bf16.msra.mxu0 %v1401_v29  ;;  %v1426_v7 = vld [vmem:[#allocation2 + $0x130] sm:$0xff]   ;;  %v1429_v11 = vld [vmem:[#allocation2 + $0x128] sm:$0xff]   ;;  %v1432_v13 = vld [vmem:[#allocation2 + $0x160] sm:$0xff]   ;;  %p1489_p11 = scmp.lt.s32.totalorder %s1704_s25, %s1487_s5  ;;  %p1490_p12 = scmp.lt.s32.totalorder %s1488_s6, %s1482_s4 }
  0x34   : > { %1237 = vmatprep.subr.bf16.mxu0 %v1404_v32  ;;  %1258 = vmatpush3.bf16.msra.mxu1 %v1411_v40  ;;  %v1434_v14 = vld [vmem:[#allocation2 + $0x1f0] sm:$0xff]   ;;  %v1433_v15 = vld [vmem:[#allocation2 + $0x120] sm:$0xff]   ;;  %v1436_v18 = vld [vmem:[#allocation2 + $0x158] sm:$0xff]   ;;  %p1485_p10 = pneg %p1484_p9 }
  0x35   : > { %235 = vperm.xlu1 %1381, %v1656_v24   ;;  %248 = vperm.xlu0 %1380, %v1656_v24   ;;  %v1435_v16 = vld [vmem:[#allocation2 + $0x1b0] sm:$0xff]   ;;  %v1438_v19 = vld [vmem:[#allocation2 + $0x1e8] sm:$0xff]   ;;  %v1437_v20 = vld [vmem:[#allocation2 + $0x118] sm:$0xff]   ;;  %p1491_p13 = por %p1490_p12, %p1489_p11 }
  0x36   : > { %1259 = vmatprep.subr.bf16.mxu1 %v1414_v43  ;;  %v1439_v21 = vld [vmem:[#allocation2 + $0x1a8] sm:$0xff]   ;;  %v1440_v23 = vld [vmem:[#allocation2 + $0x150] sm:$0xff]   ;;  %v1442_v25 = vld [vmem:[#allocation2 + $0x1e0] sm:$0xff]  }
  0x37   : > { %1238 = vmatpush3.bf16.msra.mxu0 %v1405_v33  ;;  %v1441_v26 = vld [vmem:[#allocation2 + $0x110] sm:$0xff]   ;;  %v1444_v28 = vld [vmem:[#allocation2 + $0x148] sm:$0xff]   ;;  %v1446_v29 = vld [vmem:[#allocation2 + $0x1d8] sm:$0xff]   ;;  %p1492_p0 = pnand %p1491_p13, %p1485_p10 }
  0x38   : > { %1239 = vmatprep.subr.bf16.mxu0 %v1408_v37  ;;  %1260 = vmatpush3.bf16.msra.mxu1 %v1415_v45  ;;  %v1445_v32 = vld [vmem:[#allocation2 + $0x108] sm:$0xff]   ;;  %v1447_v33 = vld [vmem:[#allocation2 + $0x198] sm:$0xff]   ;;  %v1448_v34 = vld [vmem:[#allocation2 + $0x140] sm:$0xff]  }
  0x39   : > { %238 = vperm.xlu1 %1381, %v1660_v27   ;;  %251 = vperm.xlu0 %1380, %v1660_v27   ;;  %v1450_v35 = vld [vmem:[#allocation2 + $0x1d0] sm:$0xff]   ;;  %v1449_v37 = vld [vmem:[#allocation2 + $0x100] sm:$0xff]   ;;  %v1452_v39 = vld [vmem:[#allocation2 + $0x1c8] sm:$0xff]  }
  0x3a   : > { %1261 = vmatprep.subr.bf16.mxu1 %v1418_v49 }
  0x3b   : > { %1240 = vmatpush3.bf16.msra.mxu0 %v1409_v38  ;;  %v1451_v38 = vld [vmem:[#allocation2 + $0x190] sm:$0xff]  }
  0x3c   : > { %1241 = vmatprep.subr.bf16.mxu0 %v1412_v41  ;;  %1262 = vmatpush3.bf16.msra.mxu1 %v1419_v51  ;;  %v1453_v41 = vld [vmem:[#allocation2 + $0x188] sm:$0xff]  }
  0x3d   : > { %1383 = vset.pattern.permute.xlu1 %v1553_v36  ;;  %1382 = vset.pattern.permute.xlu0 %v1553_v36 }
  0x3e   : > { %277 = vperm.xlu1 %1383, %v1660_v27   ;;  %274 = vperm.xlu0 %1382, %v1656_v24  }
  0x3f   : > { %1242 = vmatpush3.bf16.msra.mxu0 %v1413_v44  ;;  %1263 = vmatprep.subr.bf16.mxu1 %v1421_v53  ;;  %v1455_v44 = vld [vmem:[#allocation2 + $0x180] sm:$0xff]  }
  0x40   : > { %1243 = vmatprep.subr.bf16.mxu0 %v1416_v46  ;;  %1264 = vmatpush3.bf16.msra.mxu1 %v1423_v55 }
  0x41   : > { %1265 = vmatprep.subr.bf16.mxu1 %v1425_v56 }
  0x42   : > { %1384 = vset.pattern.permute.xlu1 %v1554_v42  ;;  %1385 = vset.pattern.permute.xlu0 %v1554_v42  ;;  %v1454_v42 = vld [vmem:[#allocation2 + $0x1c0] sm:$0xff]  }
  0x43   : > { %261 = vperm.xlu1 %1384, %v1656_v24   ;;  %264 = vperm.xlu0 %1385, %v1660_v27  }
  0x44   : > { %1244 = vmatpush3.bf16.msra.mxu0 %v1417_v50  ;;  %1266 = vmatpush3.bf16.msra.mxu1 %v1427_v57 }
  0x45   : > { %1273 = vmatprep.subr.bf16.mxu0 %v1420_v52  ;;  %1295 = vmatprep.subr.bf16.mxu1 %v1430_v58 }
  0x47   : > { %1386 = vset.pattern.permute.xlu1 %v1555_v47  ;;  %1387 = vset.pattern.permute.xlu0 %v1556_v48 }
  0x48   : > { %300 = vperm.xlu1 %1386, %v1656_v24   ;;  %287 = vperm.xlu0 %1387, %v1656_v24  }
  0x4c   : > { %303 = vperm.xlu1 %1386, %v1660_v27   ;;  %1390 = vset.pattern.permute.xlu0 %v1557_v54 }
  0x4d   : > { %329 = vperm.xlu0 %1390, %v1660_v27  }
  0x50   : > { %1388 = vset.pattern.permute.xlu1 %v1556_v48 }
  0x51   : > { %290 = vperm.xlu1 %1388, %v1660_v27  }
  0x55   : > { %1389 = vset.pattern.permute.xlu1 %v1557_v54 }
  0x56   : > { %326 = vperm.xlu1 %1389, %v1656_v24  }
  0x5a   : > { %1391 = vset.pattern.permute.xlu1 %v1558_v59 }
  0x5b   : > { %313 = vperm.xlu1 %1391, %v1656_v24  }
  0x5f   : > { %316 = vperm.xlu1 %1391, %v1660_v27   ;;  %v1443_v27 = vld [vmem:[#allocation2 + $0x1a0] sm:$0xff]  }
  0xb0   : > { %v236_v61 = vpop.permute.xlu1 %235  ;;  %v249_v62 = vpop.permute.xlu0 %248 }
  0xb1   : > { %vm240_vm4 = vcmp.eq.s32.totalorder %v236_v61, %v1676_v63  ;;  %vm253_vm7 = vcmp.eq.s32.totalorder %v249_v62, %v1676_v63 }
  0xb4   : > { %v239_v0 = vpop.permute.xlu1 %238  ;;  %v252_v1 = vpop.permute.xlu0 %251 }
  0xb5   : > { %vm241_vm5 = vcmp.eq.s32.totalorder %v239_v0, %v1676_v63  ;;  %vm254_vm6 = vcmp.eq.s32.totalorder %v252_v1, %v1676_v63 }
  0xb6   : > { %vm1209_vm8 = vmpackc.low %vm241_vm5, %vm240_vm4 }
  0xb7   : > { %vm1207_vm9 = vmpackc.low %vm254_vm6, %vm253_vm7 }
  0xb8   : > { %1208 = vmatprep.mubr.msk.bf16.mxu0 %vm1207_vm9, %v1559_v4 }
  0xb9   : > { %1210 = vmatmul.mubr.msk.bf16.vlgmr.msra.gmra.mxu0 %vm1209_vm8, %v1559_v4  ;;  %v278_v5 = vpop.permute.xlu1 %277  ;;  %v275_v6 = vpop.permute.xlu0 %274 }
  0xba   : > { %1274 = vmatpush3.bf16.msra.mxu0 %v1422_v2  ;;  %vm280_vm10 = vcmp.eq.s32.totalorder %v278_v5, %v1676_v63  ;;  %vm279_vm11 = vcmp.eq.s32.totalorder %v275_v6, %v1676_v63 }
  0xbb   : > { %1275 = vmatprep.subr.bf16.mxu0 %v1424_v3  ;;  %vm1211_vm12 = vmpackc.low %vm280_vm10, %vm279_vm11 }
  0xbc   : > { %1212 = vmatprep.mubr.msk.bf16.mxu1 %vm1211_vm12, %v1559_v4 }
  0xbe   : > { %1276 = vmatpush3.bf16.msra.mxu0 %v1426_v7  ;;  %v262_v9 = vpop.permute.xlu1 %261  ;;  %v265_v10 = vpop.permute.xlu0 %264 }
  0xbf   : > { %vm266_vm13 = vcmp.eq.s32.totalorder %v262_v9, %v1676_v63  ;;  %vm267_vm14 = vcmp.eq.s32.totalorder %v265_v10, %v1676_v63  ;;  %1277 = vmatprep.subr.bf16.mxu0 %v1428_v8 }
  0xc0   : > { %vm1213_vm15 = vmpackc.low %vm267_vm14, %vm266_vm13 }
  0xc1   : > { %1214 = vmatmul.mubr.msk.bf16.vlgmr.msra.gmra.mxu1 %vm1213_vm15, %v1559_v4 }
  0xc2   : > { %1278 = vmatpush3.bf16.msra.mxu0 %v1429_v11  ;;  %1296 = vmatpush3.bf16.msra.mxu1 %v1431_v12 }
  0xc3   : > { %v301_v17 = vpop.permute.xlu1 %300  ;;  %1279 = vmatprep.subr.bf16.mxu0 %v1432_v13  ;;  %1297 = vmatprep.subr.bf16.mxu1 %v1434_v14  ;;  %v288_v24 = vpop.permute.xlu0 %287 }
  0xc4   : > { %vm305_vm0 = vcmp.eq.s32.totalorder %v301_v17, %v1676_v63  ;;  %vm292_vm7 = vcmp.eq.s32.totalorder %v288_v24, %v1676_v63 }
  0xc6   : > { %1280 = vmatpush3.bf16.msra.mxu0 %v1433_v15  ;;  %1298 = vmatpush3.bf16.msra.mxu1 %v1435_v16 }
  0xc7   : > { %v304_v22 = vpop.permute.xlu1 %303  ;;  %1281 = vmatprep.subr.bf16.mxu0 %v1436_v18  ;;  %1299 = vmatprep.subr.bf16.mxu1 %v1438_v19 }
  0xc8   : > { %vm306_vm1 = vcmp.eq.s32.totalorder %v304_v22, %v1676_v63  ;;  %v330_v31 = vpop.permute.xlu0 %329 }
  0xc9   : > { %vm1215_vm2 = vmpackc.low %vm306_vm1, %vm305_vm0  ;;  %vm332_vm3 = vcmp.eq.s32.totalorder %v330_v31, %v1676_v63 }
  0xca   : > { %1282 = vmatpush3.bf16.msra.mxu0 %v1437_v20  ;;  %1300 = vmatpush3.bf16.msra.mxu1 %v1439_v21 }
  0xcb   : > { %1216 = vmatprep.mubr.msk.bf16.mxu0 %vm1215_vm2, %v1559_v4  ;;  %1283 = vmatprep.subr.bf16.mxu0 %v1440_v23 }
  0xcc   : > { %1301 = vmatprep.subr.bf16.mxu1 %v1442_v25  ;;  %v291_v30 = vpop.permute.xlu1 %290 }
  0xcd   : > { %vm293_vm6 = vcmp.eq.s32.totalorder %v291_v30, %v1676_v63 }
  0xce   : > { %1284 = vmatpush3.bf16.msra.mxu0 %v1441_v26  ;;  %1302 = vmatpush3.bf16.msra.mxu1 %v1443_v27  ;;  %vm1217_vm8 = vmpackc.low %vm293_vm6, %vm292_vm7 }
  0xcf   : > { %1285 = vmatprep.subr.bf16.mxu0 %v1444_v28  ;;  %1303 = vmatprep.subr.bf16.mxu1 %v1446_v29 }
  0xd1   : > { %v327_v36 = vpop.permute.xlu1 %326 }
  0xd2   : > { %1286 = vmatpush3.bf16.msra.mxu0 %v1445_v32  ;;  %1304 = vmatpush3.bf16.msra.mxu1 %v1447_v33  ;;  %vm331_vm4 = vcmp.eq.s32.totalorder %v327_v36, %v1676_v63 }
  0xd3   : > { %1287 = vmatprep.subr.bf16.mxu0 %v1448_v34  ;;  %1305 = vmatprep.subr.bf16.mxu1 %v1450_v35  ;;  %vm1219_vm5 = vmpackc.low %vm332_vm3, %vm331_vm4 }
  0xd4   : > { %1220 = vmatprep.mubr.msk.bf16.mxu1 %vm1219_vm5, %v1559_v4 }
  0xd6   : > { %1288 = vmatpush3.bf16.msra.mxu0 %v1449_v37  ;;  %1306 = vmatpush3.bf16.msra.mxu1 %v1451_v38  ;;  %v314_v40 = vpop.permute.xlu1 %313 }
  0xd7   : > { %1307 = vmatprep.subr.bf16.mxu1 %v1452_v39  ;;  %vm318_vm9 = vcmp.eq.s32.totalorder %v314_v40, %v1676_v63 }
  0xd9   : > { %1218 = vmatmul.mubr.msk.bf16.vlgmr.msra.gmra.mxu0 %vm1217_vm8, %v1559_v4 }
  0xda   : > { %1308 = vmatpush3.bf16.msra.mxu1 %v1453_v41  ;;  %v317_v43 = vpop.permute.xlu1 %316 }
  0xdb   : > { %1309 = vmatprep.subr.bf16.mxu1 %v1454_v42  ;;  %vm319_vm10 = vcmp.eq.s32.totalorder %v317_v43, %v1676_v63 }
  0xdc   : > { %vm1221_vm11 = vmpackc.low %vm319_vm10, %vm318_vm9 }
  0xde   : > { %1310 = vmatpush3.bf16.msra.mxu1 %v1455_v44 }
  0xe1   : > { %1222 = vmatmul.mubr.msk.bf16.vlgmr.msra.gmra.mxu1 %vm1221_vm11, %v1559_v4 }
 0x179   : > { %v1245_v45 = vpop.f32.mrf.mxu0 }
 0x17b   : > { %v1246_v46 = vpop.f32.mrf.mxu0 }
 0x17c   : > { %v1247_v57 = vadd.f32 %v1246_v46, %v1245_v45 }
 0x17d   : > { %v1248_v47 = vpop.f32.mrf.mxu0 }
 0x17f   : > { %v1249_v49 = vpop.f32.mrf.mxu0 }
 0x180   : > { %v1250_v0 = vadd.f32 %v1249_v49, %v1248_v47 }
 0x181   : > { %v1267_v48 = vpop.f32.mrf.mxu1 }
 0x183   : > { %v1268_v50 = vpop.f32.mrf.mxu1 }
 0x184   : > { %v1269_v55 = vadd.f32 %v1268_v50, %v1267_v48 }
 0x185   : > { %v1270_v52 = vpop.f32.mrf.mxu1 }
 0x186   : > { %v926_v61 = vadd.f32 %v1269_v55, %v1247_v57 }
 0x187   : > { %v1271_v56 = vpop.f32.mrf.mxu1 }
 0x188   : > { %v1272_v62 = vadd.f32 %v1271_v56, %v1270_v52 }
 0x18a   : > { %v929_v5 = vadd.f32 %v1272_v62, %v1250_v0 }
 0x199   : > { %v1289_v51 = vpop.f32.mrf.mxu0 }
 0x19b   : > { %v1290_v53 = vpop.f32.mrf.mxu0 }
 0x19c   : > { %v1291_v58 = vadd.f32 %v1290_v53, %v1289_v51 }
 0x19d   : > { %v1292_v54 = vpop.f32.mrf.mxu0 }
 0x19e   : > { %v967_v1 = vadd.f32 %v1291_v58, %v926_v61 }
 0x19f   : > { %v1293_v59 = vpop.f32.mrf.mxu0 }
 0x1a0   : > { %v1294_v2 = vadd.f32 %v1293_v59, %v1292_v54 }
 0x1a1   : > { %v1311_v60 = vpop.f32.mrf.mxu1 }
 0x1a2   : > { %v970_v8 = vadd.f32 %v1294_v2, %v929_v5 }
 0x1a3   : > { %v1312_v63 = vpop.f32.mrf.mxu1 }
 0x1a4   : > { %v1313_v3 = vadd.f32 %v1312_v63, %v1311_v60 }
 0x1a5   : > { %v1314_v4 = vpop.f32.mrf.mxu1 }
 0x1a6   : > { %v1008_v6 = vadd.f32 %v1313_v3, %v967_v1 }
 0x1a7   : > { %v1315_v7 = vpop.f32.mrf.mxu1 }
 0x1a8   : > { %1014 = vst [vmem:[%s195_s24] sm:$0xff] %v1008_v6  ;;  %v1316_v9 = vadd.f32 %v1315_v7, %v1314_v4 }
 0x1aa   : > { %v1011_v10 = vadd.f32 %v1316_v9, %v970_v8 }
 0x1ac   : > { %1015 = vst [vmem:[%s195_s24 + $0x8] sm:$0xff] %v1011_v10 }
 0x1ad   : > { %1495 = shalt.err (!%p1492_p0)
}
 0x1ae   : > { %s1496_s7 = scalar_lea.hbm %s1709_s29, 256  ;;  %s1500_s10 = scalar_lea.hbm %s1754_s3, 512 }
 0x1af   : > { %p1497_p1 = scmp.ne.s32.totalorder %s1709_s29, %s1496_s7  ;;  %p1501_p4 = scmp.lt.s32.totalorder %s1709_s29, %s1754_s3 }
 0x1b0   : > { %p1502_p7 = scmp.lt.s32.totalorder %s1500_s10, %s1496_s7 }
 0x1b1   : > { %p1498_p2 = pnand %p1497_p1, %p1621_p5 }
 0x1b2   : > { %p1503_p6 = por %p1502_p7, %p1501_p4 }
 0x1b3   : > { %p1499_p3 = pneg %p1498_p2 }
 0x1b5   : > { %p1504_p8 = pnand %p1503_p6, %p1499_p3 }
 0x1b7   : > { %1507 = shalt.err (!%p1504_p8)
}
 0x1b8   : > { %s1561_s19 = smov 128   ;;  %s1562_s20 = smov 8  }
 0x1b9   : > { %1321 = dma.vmem_to_hbm [thread:$0]  (%p1621_p5), %s1704_s25, 256, %s1709_s29, %s1711_s30, %s1561_s19, %s1561_s19, %s1562_s20  }
 0x1ba PF: > { %p1333_p9 = scmp.ge.s32.totalorder %s1546_s15, 2  ;;  %s1045_s24 = sand.u32 1, %s1534_s12  }
 0x1bb   : > { %p1758_p10 = scmp.ne.s32.totalorder %s1756_s23, 0  ;;  %s1046_s26 = scalar_lea.sflag [#allocation4], %s1045_s24 }
 0x1bd   : > { %p1328_p11 = pnand %p1333_p9, %p1758_p10 }
 0x1bf   : > { %p1329_p12 = pneg %p1328_p11 }
 0x1c1   : > { %1529 = dma.done.wait (%p1329_p12), %s1046_s26, 256  }
 0x1c2   : > { %1531 = vsyncadd (%p1329_p12), %s1046_s26, 4294967040  ;;  %p14_p13 = scmp.ge.s32.totalorder %s1608_s18, 4   ;;  %s1759_s12 = smov %s1538_s13 }
 0x1c3   : > { %s1760_s13 = smov %s1542_s14  ;;  %s1761_s14 = smov %s1619_s21 }
 0x1c4   : > { %s1762_s15 = smov %s1608_s18  ;;  %16 = sbr.rel (!%p14_p13) target bundleno = 4 (0x4), region = 75 }
 0x1c9   :  { %1051 = vsyncpa [#allocation3], 1 }
 0x1ca   :  { %1053 = vsyncpa [#allocation3 + $0x1], 1 }
 0x1cb   :  { %1054 = vsyncpa [#allocation4], 1 }
 0x1cc   :  { %1056 = vsyncpa [#allocation4 + $0x1], 1 }

</bundles_post_ra>
